<compile_context>
chip_gen: v7x
topology: tpu7x:2x2x1
jax: 0.10.0
libtpu: 0.0.40
codegen_flags: <defaults>
</compile_context>

<pallas_src>
import functools

import jax
import jax.numpy as jnp
import numpy as np
from jax import lax
from jax.experimental import pallas as pl
from jax.experimental.pallas import tpu as pltpu


def _round_up(n, m):
    return ((n + m - 1) // m) * m


def aux_head_kernel(x_ref, idx_ref, w1_ref, b1_ref, w2_ref, b2_ref, out_ref,
                    *, H, W):
    # x_ref:   (Cin_p, L)        L = N*H*W (batch folded into the lane axis)
    # idx_ref: (2, L) int32      row 0 = in-image row index, row 1 = col index
    # w1_ref:  (9, Cmid_p, Cin_p) 3x3 taps, BN scale folded, tap t = ky*3 + kx
    # b1_ref:  (Cmid_p, 1) f32   folded BN bias
    # w2_ref:  (nc, Cmid_p)      1x1 conv weight
    # b2_ref:  (nc, 1) f32       1x1 conv bias
    # out_ref: (nc, L) f32       lane-dense logits
    L = x_ref.shape[1]
    Cmid = w1_ref.shape[1]
    mxu_dtype = w1_ref.dtype

    # Rolls, masks, bias and ReLU run in f32 (32-bit XLU/VPU path is the
    # portable one on v5e/v6e/v7x); only the MXU operands are narrowed.
    x = x_ref[...].astype(jnp.float32)                     # (Cin_p, L)

    # Border-validity masks, hoisted out of the tap loop (integer compares).
    row = idx_ref[0:1, :]                                  # (1, L) int32
    col = idx_ref[1:2, :]
    top_ok = row >= 1                                      # row - 1 exists
    bot_ok = row <= H - 2                                  # row + 1 exists
    left_ok = col >= 1                                     # col - 1 exists
    right_ok = col <= W - 2                                # col + 1 exists

    # 3x3 conv with SAME zero padding as 9 accumulated MXU dots.  Tap (ky, kx)
    # needs x[p + dy*W + dx]; that is a lane rotation of the flattened image,
    # and every wrapped / cross-image lane is one the mask zeroes anyway.
    acc = jnp.zeros((Cmid, L), jnp.float32)
    for ky in range(3):
        for kx in range(3):
            dy, dx = ky - 1, kx - 1
            t = ky * 3 + kx
            off = dy * W + dx
            xt = x if off == 0 else pltpu.roll(x, shift=(-off) % L, axis=1)

            mask = None
            if dy == -1:
                mask = top_ok
            elif dy == 1:
                mask = bot_ok
            if dx == -1:
                mask = left_ok if mask is None else jnp.logical_and(mask, left_ok)
            elif dx == 1:
                mask = right_ok if mask is None else jnp.logical_and(mask, right_ok)
            if mask is not None:
                xt = jnp.where(mask, xt, 0.0)              # full-width, no stores

            acc = acc + jnp.dot(w1_ref[t], xt.astype(mxu_dtype),
                                preferred_element_type=jnp.float32)

    # Folded-BN bias + ReLU (f32), then the 1x1 conv as a second MXU dot.
    hid = jnp.maximum(acc + b1_ref[...], 0.0)
    out = jnp.dot(w2_ref[...], hid.astype(mxu_dtype),
                  preferred_element_type=jnp.float32) + b2_ref[...]
    out_ref[...] = out.astype(out_ref.dtype)


def aux_branch_pallas(x_nchw, w1_taps, b1, w2, b2):
    N, Cin, H, W = x_nchw.shape
    L = N * H * W
    nc = w2.shape[0]
    Cin_p = w1_taps.shape[2]
    mxu_dtype = w1_taps.dtype

    # Fold the batch into the lane axis: (N, Cin, H, W) -> (Cin, N*H*W), pad
    # channels to the MXU tile, ship to the kernel in bf16 (half HBM traffic).
    x2d = jnp.transpose(x_nchw, (1, 0, 2, 3)).reshape(Cin, L)
    if Cin_p != Cin:
        x2d = jnp.pad(x2d, ((0, Cin_p - Cin), (0, 0)))
    x2d = x2d.astype(mxu_dtype)

    # Per-lane in-image row / column indices (tiny, constant-folded by XLA).
    pos = jnp.arange(H * W, dtype=jnp.int32)
    idx = jnp.stack([jnp.tile(pos // W, N), jnp.tile(pos % W, N)], axis=0)

    vmem = pl.BlockSpec(memory_space=pltpu.MemorySpace.VMEM)
    out2d = pl.pallas_call(
        functools.partial(aux_head_kernel, H=H, W=W),
        out_shape=jax.ShapeDtypeStruct((nc, L), jnp.float32),
        in_specs=[vmem] * 6,
        out_specs=vmem,
    )(x2d, idx, w1_taps, b1, w2, b2)

    # (nc, N*H*W) -> (N, nc, H, W)
    return jnp.transpose(out2d.reshape(nc, N, H, W), (1, 0, 2, 3))


def fold_branch_params(p, eps=1e-5, mxu_dtype=jnp.bfloat16, align=16):
    """One-time preprocessing: fold BN (eval mode) into the 3x3 conv, lay the
    weights out per-tap, zero-pad channel dims to the MXU/bf16 tile."""
    w1 = p["w1"]                                           # (Cmid, Cin, 3, 3) OIHW
    Cmid, Cin = w1.shape[0], w1.shape[1]
    Cin_p, Cmid_p = _round_up(Cin, align), _round_up(Cmid, align)

    scale = p["gamma"] / jnp.sqrt(p["var"] + eps)          # (Cmid,)
    b1 = p["beta"] - p["mean"] * scale                     # (Cmid,)
    w1f = w1 * scale[:, None, None, None]                  # fold BN scale

    # tap t = ky*3 + kx  ->  w1_taps[t] = w1f[:, :, ky, kx]   (Cmid, Cin)
    w1_taps = jnp.transpose(w1f, (2, 3, 0, 1)).reshape(9, Cmid, Cin)
    w1_taps = jnp.pad(w1_taps, ((0, 0), (0, Cmid_p - Cmid), (0, Cin_p - Cin)))
    b1 = jnp.pad(b1, (0, Cmid_p - Cmid)).reshape(Cmid_p, 1)
    w2 = jnp.pad(p["w2"], ((0, 0), (0, Cmid_p - Cmid)))    # (nc, Cmid_p)
    b2 = p["b2"].reshape(-1, 1)

    return (w1_taps.astype(mxu_dtype), b1.astype(jnp.float32),
            w2.astype(mxu_dtype), b2.astype(jnp.float32))


def aux_head_forward(auxs_nchw, params_list, mxu_dtype=jnp.bfloat16):
    """AuxHead.forward: list of NCHW feature maps -> list of NCHW logits."""
    outs = []
    for x_nchw, p in zip(auxs_nchw, params_list):
        w1_taps, b1, w2, b2 = fold_branch_params(p, mxu_dtype=mxu_dtype)
        outs.append(aux_branch_pallas(x_nchw, w1_taps, b1, w2, b2))
    return outs


def make_branch_params(key, in_ch, mid_ch, n_classes):
    k1, k2, k3, k4, k5, k6 = jax.random.split(key, 6)
    w1 = jax.random.normal(k1, (mid_ch, in_ch, 3, 3), jnp.float32) * 0.1   # OIHW
    gamma = 1.0 + 0.1 * jax.random.normal(k2, (mid_ch,), jnp.float32)
    beta = 0.1 * jax.random.normal(k3, (mid_ch,), jnp.float32)
    running_mean = 0.1 * jax.random.normal(k4, (mid_ch,), jnp.float32)
    running_var = 1.0 + 0.1 * jax.random.uniform(k5, (mid_ch,), jnp.float32)
    w2 = jax.random.normal(k6, (n_classes, mid_ch), jnp.float32) * 0.1     # (O, I)
    b2 = jnp.linspace(-0.5, 0.5, n_classes, dtype=jnp.float32)
    return dict(w1=w1, gamma=gamma, beta=beta, mean=running_mean,
                var=running_var, w2=w2, b2=b2)


def ref_branch(x_nchw, p, eps=1e-5, mxu_dtype=None):
    """Pure-JAX reference.  If mxu_dtype is set, the matmul operands are
    quantized exactly like the kernel quantizes them (f32 accumulation)."""
    scale = p["gamma"] / jnp.sqrt(p["var"] + eps)
    w1f = p["w1"] * scale[:, None, None, None]
    b1 = p["beta"] - p["mean"] * scale
    x, w2 = x_nchw, p["w2"]
    if mxu_dtype is not None:
        x, w1f, w2 = x.astype(mxu_dtype), w1f.astype(mxu_dtype), w2.astype(mxu_dtype)
    y = lax.conv_general_dilated(
        x, w1f, window_strides=(1, 1), padding="SAME",
        dimension_numbers=("NCHW", "OIHW", "NCHW"),
        preferred_element_type=jnp.float32)
    y = jnp.maximum(y + b1[None, :, None, None], 0.0)
    if mxu_dtype is not None:
        y = y.astype(mxu_dtype)
    out = jnp.einsum("nchw,kc->nkhw", y, w2,
                     preferred_element_type=jnp.float32)
    return out + p["b2"][None, :, None, None]


if __name__ == "__main__":
    key = jax.random.PRNGKey(0)
    in_channels = [4, 8]
    mid_channels = [8, 16]
    n_classes = 5

    k_x0, k_x1, k_p0, k_p1 = jax.random.split(key, 4)
    # PyTorch-style NCHW inputs (two auxiliary feature maps).
    x0 = jax.random.normal(k_x0, (2, 4, 16, 16), jnp.float32)
    x1 = jax.random.normal(k_x1, (2, 8, 8, 8), jnp.float32)
    auxs = [x0, x1]

    params = [
        make_branch_params(k_p0, in_channels[0], mid_channels[0], n_classes),
        make_branch_params(k_p1, in_channels[1], mid_channels[1], n_classes),
    ]

    outs = aux_head_forward(auxs, params)
    outs = [jax.block_until_ready(o) for o in outs]

    for x_nchw, p, o in zip(auxs, params, outs):
        # Primary check: against a reference quantized the same way (bf16
        # operands, f32 accumulation) -> only accumulation-order differences.
        ref_q = ref_branch(x_nchw, p, mxu_dtype=jnp.bfloat16)
        np.testing.assert_allclose(np.asarray(o), np.asarray(ref_q),
                                   rtol=1e-2, atol=1e-2)
        # Sanity check: against the full-f32 module semantics.
        ref_f = ref_branch(x_nchw, p)
        np.testing.assert_allclose(np.asarray(o), np.asarray(ref_f),
                                   rtol=5e-2, atol=5e-2)

    assert outs[0].shape == (2, n_classes, 16, 16)
    assert outs[1].shape == (2, n_classes, 8, 8)
    print("KERNEL_OK")
</pallas_src>

<mosaic_0001>
module attributes {stable_mosaic.version = 11 : i64} {
  func.func @aux_head_kernel(%arg0: memref<16x512xbf16, #tpu.memory_space<vmem>>, %arg1: memref<2x512xi32, #tpu.memory_space<vmem>>, %arg2: memref<9x16x16xbf16, #tpu.memory_space<vmem>>, %arg3: memref<16x1xf32, #tpu.memory_space<vmem>>, %arg4: memref<5x16xbf16, #tpu.memory_space<vmem>>, %arg5: memref<5x1xf32, #tpu.memory_space<vmem>>, %arg6: memref<5x512xf32, #tpu.memory_space<vmem>>) attributes {dimension_semantics = [], scalar_prefetch = 0 : i64, scratch_operands = 0 : i64, tpu.core_type = #tpu.core_type<tc>} {
    %c0 = arith.constant 0 : index
    %c0_0 = arith.constant 0 : index
    %0 = vector.load %arg0[%c0, %c0_0] : memref<16x512xbf16, #tpu.memory_space<vmem>>, vector<16x512xbf16>
    %1 = arith.extf %0 : vector<16x512xbf16> to vector<16x512xf32>
    %c0_1 = arith.constant 0 : index
    %c0_2 = arith.constant 0 : index
    %2 = vector.load %arg1[%c0_1, %c0_2] : memref<2x512xi32, #tpu.memory_space<vmem>>, vector<1x512xi32>
    %c1 = arith.constant 1 : index
    %c0_3 = arith.constant 0 : index
    %3 = vector.load %arg1[%c1, %c0_3] : memref<2x512xi32, #tpu.memory_space<vmem>>, vector<1x512xi32>
    %c1_i32 = arith.constant 1 : i32
    %4 = vector.broadcast %c1_i32 : i32 to vector<1x512xi32>
    %5 = arith.cmpi sge, %2, %4 : vector<1x512xi32>
    %c14_i32 = arith.constant 14 : i32
    %6 = vector.broadcast %c14_i32 : i32 to vector<1x512xi32>
    %7 = arith.cmpi sle, %2, %6 : vector<1x512xi32>
    %c1_i32_4 = arith.constant 1 : i32
    %8 = vector.broadcast %c1_i32_4 : i32 to vector<1x512xi32>
    %9 = arith.cmpi sge, %3, %8 : vector<1x512xi32>
    %c14_i32_5 = arith.constant 14 : i32
    %10 = vector.broadcast %c14_i32_5 : i32 to vector<1x512xi32>
    %11 = arith.cmpi sle, %3, %10 : vector<1x512xi32>
    %cst = arith.constant 0.000000e+00 : f32
    %12 = vector.broadcast %cst : f32 to vector<16x512xf32>
    %c17_i32 = arith.constant 17 : i32
    %13 = tpu.dynamic_rotate %1 by %c17_i32 dim 1 : vector<16x512xf32>, i32 -> vector<16x512xf32>
    %14 = arith.andi %5, %9 : vector<1x512xi1>
    %cst_6 = arith.constant 0.000000e+00 : f32
    %15 = vector.shape_cast %14 : vector<1x512xi1> to vector<1x512xi1>
    %16 = vector.broadcast %15 : vector<1x512xi1> to vector<16x512xi1>
    %17 = vector.broadcast %cst_6 : f32 to vector<16x512xf32>
    %18 = arith.select %16, %13, %17 : vector<16x512xi1>, vector<16x512xf32>
    %c0_7 = arith.constant 0 : index
    %c0_8 = arith.constant 0 : index
    %c0_9 = arith.constant 0 : index
    %19 = vector.load %arg2[%c0_7, %c0_8, %c0_9] : memref<9x16x16xbf16, #tpu.memory_space<vmem>>, vector<1x16x16xbf16>
    %20 = vector.shape_cast %19 : vector<1x16x16xbf16> to vector<16x16xbf16>
    %21 = arith.truncf %18 : vector<16x512xf32> to vector<16x512xbf16>
    %cst_10 = arith.constant dense<0.000000e+00> : vector<16x512xf32>
    %22 = tpu.matmul %20, %21, %cst_10 {dimension_numbers = #tpu.dot_dimension_numbers<[1], [0], [0], [1], [0, 0, 1, 1], [], []>} : vector<16x16xbf16>, vector<16x512xbf16>, vector<16x512xf32> -> vector<16x512xf32>
    %23 = arith.addf %12, %22 : vector<16x512xf32>
    %c16_i32 = arith.constant 16 : i32
    %24 = tpu.dynamic_rotate %1 by %c16_i32 dim 1 : vector<16x512xf32>, i32 -> vector<16x512xf32>
    %cst_11 = arith.constant 0.000000e+00 : f32
    %25 = vector.shape_cast %5 : vector<1x512xi1> to vector<1x512xi1>
    %26 = vector.broadcast %25 : vector<1x512xi1> to vector<16x512xi1>
    %27 = vector.broadcast %cst_11 : f32 to vector<16x512xf32>
    %28 = arith.select %26, %24, %27 : vector<16x512xi1>, vector<16x512xf32>
    %c1_12 = arith.constant 1 : index
    %c0_13 = arith.constant 0 : index
    %c0_14 = arith.constant 0 : index
    %29 = vector.load %arg2[%c1_12, %c0_13, %c0_14] : memref<9x16x16xbf16, #tpu.memory_space<vmem>>, vector<1x16x16xbf16>
    %30 = vector.shape_cast %29 : vector<1x16x16xbf16> to vector<16x16xbf16>
    %31 = arith.truncf %28 : vector<16x512xf32> to vector<16x512xbf16>
    %cst_15 = arith.constant dense<0.000000e+00> : vector<16x512xf32>
    %32 = tpu.matmul %30, %31, %cst_15 {dimension_numbers = #tpu.dot_dimension_numbers<[1], [0], [0], [1], [0, 0, 1, 1], [], []>} : vector<16x16xbf16>, vector<16x512xbf16>, vector<16x512xf32> -> vector<16x512xf32>
    %33 = arith.addf %23, %32 : vector<16x512xf32>
    %c15_i32 = arith.constant 15 : i32
    %34 = tpu.dynamic_rotate %1 by %c15_i32 dim 1 : vector<16x512xf32>, i32 -> vector<16x512xf32>
    %35 = arith.andi %5, %11 : vector<1x512xi1>
    %cst_16 = arith.constant 0.000000e+00 : f32
    %36 = vector.shape_cast %35 : vector<1x512xi1> to vector<1x512xi1>
    %37 = vector.broadcast %36 : vector<1x512xi1> to vector<16x512xi1>
    %38 = vector.broadcast %cst_16 : f32 to vector<16x512xf32>
    %39 = arith.select %37, %34, %38 : vector<16x512xi1>, vector<16x512xf32>
    %c2 = arith.constant 2 : index
    %c0_17 = arith.constant 0 : index
    %c0_18 = arith.constant 0 : index
    %40 = vector.load %arg2[%c2, %c0_17, %c0_18] : memref<9x16x16xbf16, #tpu.memory_space<vmem>>, vector<1x16x16xbf16>
    %41 = vector.shape_cast %40 : vector<1x16x16xbf16> to vector<16x16xbf16>
    %42 = arith.truncf %39 : vector<16x512xf32> to vector<16x512xbf16>
    %cst_19 = arith.constant dense<0.000000e+00> : vector<16x512xf32>
    %43 = tpu.matmul %41, %42, %cst_19 {dimension_numbers = #tpu.dot_dimension_numbers<[1], [0], [0], [1], [0, 0, 1, 1], [], []>} : vector<16x16xbf16>, vector<16x512xbf16>, vector<16x512xf32> -> vector<16x512xf32>
    %44 = arith.addf %33, %43 : vector<16x512xf32>
    %c1_i32_20 = arith.constant 1 : i32
    %45 = tpu.dynamic_rotate %1 by %c1_i32_20 dim 1 : vector<16x512xf32>, i32 -> vector<16x512xf32>
    %cst_21 = arith.constant 0.000000e+00 : f32
    %46 = vector.shape_cast %9 : vector<1x512xi1> to vector<1x512xi1>
    %47 = vector.broadcast %46 : vector<1x512xi1> to vector<16x512xi1>
    %48 = vector.broadcast %cst_21 : f32 to vector<16x512xf32>
    %49 = arith.select %47, %45, %48 : vector<16x512xi1>, vector<16x512xf32>
    %c3 = arith.constant 3 : index
    %c0_22 = arith.constant 0 : index
    %c0_23 = arith.constant 0 : index
    %50 = vector.load %arg2[%c3, %c0_22, %c0_23] : memref<9x16x16xbf16, #tpu.memory_space<vmem>>, vector<1x16x16xbf16>
    %51 = vector.shape_cast %50 : vector<1x16x16xbf16> to vector<16x16xbf16>
    %52 = arith.truncf %49 : vector<16x512xf32> to vector<16x512xbf16>
    %cst_24 = arith.constant dense<0.000000e+00> : vector<16x512xf32>
    %53 = tpu.matmul %51, %52, %cst_24 {dimension_numbers = #tpu.dot_dimension_numbers<[1], [0], [0], [1], [0, 0, 1, 1], [], []>} : vector<16x16xbf16>, vector<16x512xbf16>, vector<16x512xf32> -> vector<16x512xf32>
    %54 = arith.addf %44, %53 : vector<16x512xf32>
    %c4 = arith.constant 4 : index
    %c0_25 = arith.constant 0 : index
    %c0_26 = arith.constant 0 : index
    %55 = vector.load %arg2[%c4, %c0_25, %c0_26] : memref<9x16x16xbf16, #tpu.memory_space<vmem>>, vector<1x16x16xbf16>
    %56 = vector.shape_cast %55 : vector<1x16x16xbf16> to vector<16x16xbf16>
    %57 = arith.truncf %1 : vector<16x512xf32> to vector<16x512xbf16>
    %cst_27 = arith.constant dense<0.000000e+00> : vector<16x512xf32>
    %58 = tpu.matmul %56, %57, %cst_27 {dimension_numbers = #tpu.dot_dimension_numbers<[1], [0], [0], [1], [0, 0, 1, 1], [], []>} : vector<16x16xbf16>, vector<16x512xbf16>, vector<16x512xf32> -> vector<16x512xf32>
    %59 = arith.addf %54, %58 : vector<16x512xf32>
    %c511_i32 = arith.constant 511 : i32
    %60 = tpu.dynamic_rotate %1 by %c511_i32 dim 1 : vector<16x512xf32>, i32 -> vector<16x512xf32>
    %cst_28 = arith.constant 0.000000e+00 : f32
    %61 = vector.shape_cast %11 : vector<1x512xi1> to vector<1x512xi1>
    %62 = vector.broadcast %61 : vector<1x512xi1> to vector<16x512xi1>
    %63 = vector.broadcast %cst_28 : f32 to vector<16x512xf32>
    %64 = arith.select %62, %60, %63 : vector<16x512xi1>, vector<16x512xf32>
    %c5 = arith.constant 5 : index
    %c0_29 = arith.constant 0 : index
    %c0_30 = arith.constant 0 : index
    %65 = vector.load %arg2[%c5, %c0_29, %c0_30] : memref<9x16x16xbf16, #tpu.memory_space<vmem>>, vector<1x16x16xbf16>
    %66 = vector.shape_cast %65 : vector<1x16x16xbf16> to vector<16x16xbf16>
    %67 = arith.truncf %64 : vector<16x512xf32> to vector<16x512xbf16>
    %cst_31 = arith.constant dense<0.000000e+00> : vector<16x512xf32>
    %68 = tpu.matmul %66, %67, %cst_31 {dimension_numbers = #tpu.dot_dimension_numbers<[1], [0], [0], [1], [0, 0, 1, 1], [], []>} : vector<16x16xbf16>, vector<16x512xbf16>, vector<16x512xf32> -> vector<16x512xf32>
    %69 = arith.addf %59, %68 : vector<16x512xf32>
    %c497_i32 = arith.constant 497 : i32
    %70 = tpu.dynamic_rotate %1 by %c497_i32 dim 1 : vector<16x512xf32>, i32 -> vector<16x512xf32>
    %71 = arith.andi %7, %9 : vector<1x512xi1>
    %cst_32 = arith.constant 0.000000e+00 : f32
    %72 = vector.shape_cast %71 : vector<1x512xi1> to vector<1x512xi1>
    %73 = vector.broadcast %72 : vector<1x512xi1> to vector<16x512xi1>
    %74 = vector.broadcast %cst_32 : f32 to vector<16x512xf32>
    %75 = arith.select %73, %70, %74 : vector<16x512xi1>, vector<16x512xf32>
    %c6 = arith.constant 6 : index
    %c0_33 = arith.constant 0 : index
    %c0_34 = arith.constant 0 : index
    %76 = vector.load %arg2[%c6, %c0_33, %c0_34] : memref<9x16x16xbf16, #tpu.memory_space<vmem>>, vector<1x16x16xbf16>
    %77 = vector.shape_cast %76 : vector<1x16x16xbf16> to vector<16x16xbf16>
    %78 = arith.truncf %75 : vector<16x512xf32> to vector<16x512xbf16>
    %cst_35 = arith.constant dense<0.000000e+00> : vector<16x512xf32>
    %79 = tpu.matmul %77, %78, %cst_35 {dimension_numbers = #tpu.dot_dimension_numbers<[1], [0], [0], [1], [0, 0, 1, 1], [], []>} : vector<16x16xbf16>, vector<16x512xbf16>, vector<16x512xf32> -> vector<16x512xf32>
    %80 = arith.addf %69, %79 : vector<16x512xf32>
    %c496_i32 = arith.constant 496 : i32
    %81 = tpu.dynamic_rotate %1 by %c496_i32 dim 1 : vector<16x512xf32>, i32 -> vector<16x512xf32>
    %cst_36 = arith.constant 0.000000e+00 : f32
    %82 = vector.shape_cast %7 : vector<1x512xi1> to vector<1x512xi1>
    %83 = vector.broadcast %82 : vector<1x512xi1> to vector<16x512xi1>
    %84 = vector.broadcast %cst_36 : f32 to vector<16x512xf32>
    %85 = arith.select %83, %81, %84 : vector<16x512xi1>, vector<16x512xf32>
    %c7 = arith.constant 7 : index
    %c0_37 = arith.constant 0 : index
    %c0_38 = arith.constant 0 : index
    %86 = vector.load %arg2[%c7, %c0_37, %c0_38] : memref<9x16x16xbf16, #tpu.memory_space<vmem>>, vector<1x16x16xbf16>
    %87 = vector.shape_cast %86 : vector<1x16x16xbf16> to vector<16x16xbf16>
    %88 = arith.truncf %85 : vector<16x512xf32> to vector<16x512xbf16>
    %cst_39 = arith.constant dense<0.000000e+00> : vector<16x512xf32>
    %89 = tpu.matmul %87, %88, %cst_39 {dimension_numbers = #tpu.dot_dimension_numbers<[1], [0], [0], [1], [0, 0, 1, 1], [], []>} : vector<16x16xbf16>, vector<16x512xbf16>, vector<16x512xf32> -> vector<16x512xf32>
    %90 = arith.addf %80, %89 : vector<16x512xf32>
    %c495_i32 = arith.constant 495 : i32
    %91 = tpu.dynamic_rotate %1 by %c495_i32 dim 1 : vector<16x512xf32>, i32 -> vector<16x512xf32>
    %92 = arith.andi %7, %11 : vector<1x512xi1>
    %cst_40 = arith.constant 0.000000e+00 : f32
    %93 = vector.shape_cast %92 : vector<1x512xi1> to vector<1x512xi1>
    %94 = vector.broadcast %93 : vector<1x512xi1> to vector<16x512xi1>
    %95 = vector.broadcast %cst_40 : f32 to vector<16x512xf32>
    %96 = arith.select %94, %91, %95 : vector<16x512xi1>, vector<16x512xf32>
    %c8 = arith.constant 8 : index
    %c0_41 = arith.constant 0 : index
    %c0_42 = arith.constant 0 : index
    %97 = vector.load %arg2[%c8, %c0_41, %c0_42] : memref<9x16x16xbf16, #tpu.memory_space<vmem>>, vector<1x16x16xbf16>
    %98 = vector.shape_cast %97 : vector<1x16x16xbf16> to vector<16x16xbf16>
    %99 = arith.truncf %96 : vector<16x512xf32> to vector<16x512xbf16>
    %cst_43 = arith.constant dense<0.000000e+00> : vector<16x512xf32>
    %100 = tpu.matmul %98, %99, %cst_43 {dimension_numbers = #tpu.dot_dimension_numbers<[1], [0], [0], [1], [0, 0, 1, 1], [], []>} : vector<16x16xbf16>, vector<16x512xbf16>, vector<16x512xf32> -> vector<16x512xf32>
    %101 = arith.addf %90, %100 : vector<16x512xf32>
    %c0_44 = arith.constant 0 : index
    %c0_45 = arith.constant 0 : index
    %102 = vector.load %arg3[%c0_44, %c0_45] : memref<16x1xf32, #tpu.memory_space<vmem>>, vector<16x1xf32>
    %103 = vector.broadcast %102 : vector<16x1xf32> to vector<16x512xf32>
    %104 = arith.addf %101, %103 : vector<16x512xf32>
    %cst_46 = arith.constant 0.000000e+00 : f32
    %105 = vector.broadcast %cst_46 : f32 to vector<16x512xf32>
    %106 = arith.maximumf %104, %105 : vector<16x512xf32>
    %c0_47 = arith.constant 0 : index
    %c0_48 = arith.constant 0 : index
    %107 = vector.load %arg4[%c0_47, %c0_48] : memref<5x16xbf16, #tpu.memory_space<vmem>>, vector<5x16xbf16>
    %108 = arith.truncf %106 : vector<16x512xf32> to vector<16x512xbf16>
    %cst_49 = arith.constant dense<0.000000e+00> : vector<5x512xf32>
    %109 = tpu.matmul %107, %108, %cst_49 {dimension_numbers = #tpu.dot_dimension_numbers<[1], [0], [0], [1], [0, 0, 1, 1], [], []>} : vector<5x16xbf16>, vector<16x512xbf16>, vector<5x512xf32> -> vector<5x512xf32>
    %c0_50 = arith.constant 0 : index
    %c0_51 = arith.constant 0 : index
    %110 = vector.load %arg5[%c0_50, %c0_51] : memref<5x1xf32, #tpu.memory_space<vmem>>, vector<5x1xf32>
    %111 = vector.broadcast %110 : vector<5x1xf32> to vector<5x512xf32>
    %112 = arith.addf %109, %111 : vector<5x512xf32>
    %c0_52 = arith.constant 0 : index
    %c0_53 = arith.constant 0 : index
    %113 = vector.load %arg6[%c0_52, %c0_53] : memref<5x512xf32, #tpu.memory_space<vmem>>, vector<5x512xf32>
    tpu.vector_store %arg6[%c0_52, %c0_53], %112 {strides = array<i32>} : memref<5x512xf32, #tpu.memory_space<vmem>>, vector<5x512xf32>,
    return
  }
}

</mosaic_0001>

<bundles_post_ra>
// kernel: tpu_custom_call.1
= control target key start
LH: loop header
LB: loop body
LE: loop exit
PB: predicated region body
PF: predicated region fallthrough
CT: control target
= control target key end

     0   :  { %11 = vsyncpa [#allocation3], 0  ;;  %s2784_s0 = inlined_call_operand.hbm [shape: bf16[16,512], index: 0, kind: input, shape index: {}]   ;;  %s2785_s1 = inlined_call_operand.vmem [shape: s32[2,512], index: 1, kind: input, shape index: {}]   ;;  %s2786_s2 = inlined_call_operand.hbm [shape: bf16[9,16,16], index: 2, kind: input, shape index: {}]   ;;  %s2787_s3 = inlined_call_operand.vmem [shape: f32[16,1], index: 3, kind: input, shape index: {}]   ;;  %s2788_s4 = inlined_call_operand.vmem [shape: bf16[5,16], index: 4, kind: input, shape index: {}]   ;;  %s2789_s5 = inlined_call_operand.vmem [shape: f32[5,1], index: 5, kind: input, shape index: {}]   ;;  %s2790_s6 = inlined_call_operand.hbm [shape: f32[5,512], index: 6, kind: output, shape index: {}]  }
   0x1   :  { %12 = vsyncpa [#allocation6], 0 }
   0x2   :  { %13 = vsyncpa [#allocation4], 0  ;;  %s2091_s21 = smov [#allocation2]   ;;  %s2019_s25 = scalar_lea.hbm %s2784_s0, 512 }
   0x3   :  { %s19_s22 = sshll.u32 %s2091_s21, 4  ;;  %p2020_p0 = scmp.ne.s32.totalorder %s2784_s0, %s2019_s25  ;;  %s20_s22 = int_to_ptr.vmem [resolvable:$true] %s19_s22 }
   0x4   :  { %p2023_p1 = scmp.lt.u32.totalorder %s2019_s25, %s2784_s0 }
   0x6   :  { %p2025_p2 = pnand %p2023_p1, %p2020_p0 }
   0x8   :  { %2028 = shalt.err (!%p2025_p2)
}
   0x9   :  { %s2029_s30 = scalar_lea.vmem %s20_s22, 512  ;;  %p2034_p4 = scmp.lt.s32.totalorder %s20_s22, %s20_s22 }
   0xa   :  { %p2030_p3 = scmp.ne.s32.totalorder %s20_s22, %s2029_s30  ;;  %p2035_p5 = scmp.lt.s32.totalorder %s2029_s30, %s2029_s30 }
   0xc   :  { %p2036_p6 = por %p2035_p5, %p2034_p4 }
   0xe   :  { %p2037_p7 = pnand %p2036_p6, %p2030_p3 }
  0x10   :  { %2040 = shalt.err (!%p2037_p7)
}
  0x11   :  { %s2092_s7 = smov 256   ;;  %s2093_s8 = smov 16  }
  0x12   :  { %25 = dma.hbm_to_vmem [thread:$0]  %s2784_s0, 512, %s20_s22, [#allocation3], %s2092_s7, %s2092_s7, %s2093_s8  }
  0x13   :  { %s2094_s11 = smov [#allocation5]   ;;  %s2041_s15 = scalar_lea.hbm %s2786_s2, 1152 }
  0x14   :  { %s33_s12 = sshll.u32 %s2094_s11, 4  ;;  %p2042_p8 = scmp.ne.s32.totalorder %s2786_s2, %s2041_s15  ;;  %s34_s12 = int_to_ptr.vmem [resolvable:$true] %s33_s12 }
  0x15   :  { %p2045_p9 = scmp.lt.u32.totalorder %s2041_s15, %s2786_s2 }
  0x17   :  { %p2047_p10 = pnand %p2045_p9, %p2042_p8 }
  0x19   :  { %2050 = shalt.err (!%p2047_p10)
}
  0x1a   :  { %s2051_s20 = scalar_lea.vmem %s34_s12, 1152  ;;  %p2056_p12 = scmp.lt.s32.totalorder %s34_s12, %s34_s12 }
  0x1b   :  { %p2052_p11 = scmp.ne.s32.totalorder %s34_s12, %s2051_s20  ;;  %p2057_p13 = scmp.lt.s32.totalorder %s2051_s20, %s2051_s20 }
  0x1d   :  { %p2058_p0 = por %p2057_p13, %p2056_p12 }
  0x1f   :  { %p2059_p1 = pnand %p2058_p0, %p2052_p11 }
  0x21   :  { %2062 = shalt.err (!%p2059_p1)
}
  0x22   :  { %s2095_s0 = smov 64   ;;  %s2096_s21 = smov 4  }
  0x23   :  { %39 = dma.hbm_to_vmem [thread:$0]  %s2786_s2, 1152, %s34_s12, [#allocation6], %s2095_s0, %s2095_s0, %s2096_s21  }
  0x24   :  { %2085 = dma.done.wait [#allocation3], 512  }
  0x25   :  { %2086 = vsyncadd [#allocation3], 4294966784 }
  0x26   :  { %2087 = dma.done.wait [#allocation6], 1152  }
  0x27   :  { %2088 = vsyncadd [#allocation6], 4294966144  ;;  %v2097_v0 = vmov 0   ;;  %v2170_v1 = vld [vmem:[#allocation2 + $0x8] sm:$0xff]  ;;  %v2172_v2 = vld [vmem:[#allocation2 + $0x18] sm:$0xff]  ;;  %s2098_s2 = smov 17   ;;  %v88_v23 = vlaneseq }
  0x28   :  { %237 = vmatprep.mubr.bf16.mxu0 %v2097_v0  ;;  %280 = vmatprep.mubr.bf16.mxu1 %v2097_v0  ;;  %v2174_v3 = vld [vmem:[#allocation2] sm:$0xff]  ;;  %v59_v4 = vunpack.c.l.bf16 %v2170_v1  ;;  %v63_v5 = vunpack.c.l.bf16 %v2172_v2  ;;  %v2178_v6 = vld [vmem:[#allocation2 + $0x10] sm:$0xff]  ;;  %v60_v8 = vunpack.c.h.bf16 %v2170_v1  ;;  %v64_v10 = vunpack.c.h.bf16 %v2172_v2  ;;  %s2099_s24 = smov 15   ;;  %s2100_s25 = smov 1   ;;  %v1492_v21 = vld [vmem:[%s2787_s3 + $0x8] sm:$0xff] }
  0x29   :  { %2005 = vset.pattern.permute.xlu1 %v2097_v0  ;;  %2004 = vset.pattern.permute.xlu0 %v2097_v0  ;;  %v57_v7 = vunpack.c.l.bf16 %v2174_v3  ;;  %v61_v9 = vunpack.c.l.bf16 %v2178_v6  ;;  %v58_v11 = vunpack.c.h.bf16 %v2174_v3  ;;  %v62_v12 = vunpack.c.h.bf16 %v2178_v6  ;;  %s2101_s26 = smov 127   ;;  %s2102_s27 = smov 113   ;;  %v1491_v22 = vld [vmem:[%s2787_s3] sm:$0xff] }
  0x2a   :  { %v1854_v13 = vpack.i.bf16 %v63_v5, %v59_v4  ;;  %v1859_v15 = vpack.i.bf16 %v64_v10, %v60_v8  ;;  %v1698_v17 = vcombine.high %v2174_v3, %v2178_v6  ;;  %v1700_v18 = vcombine.high %v2170_v1, %v2172_v2  ;;  %s2103_s28 = smov 112   ;;  %s2104_s29 = smov 111   ;;  %v1524_v24 = vld [vmem:[%s2789_s5] sm:$0x1f] }
  0x2b   :  { %v1844_v14 = vpack.i.bf16 %v61_v9, %v57_v7  ;;  %v1849_v16 = vpack.i.bf16 %v62_v12, %v58_v11  ;;  %v1697_v19 = vcombine.low %v2174_v3, %v2178_v6  ;;  %v1699_v20 = vcombine.low %v2170_v1, %v2172_v2  ;;  %v2210_v25 = vld [vmem:[%s2785_s1] ss:$2 sm:$0xf]  ;;  %v2215_v27 = vld [vmem:[%s2785_s1 + $0x1] ss:$2 sm:$0xf] }
  0x2c   :  { %1855 = vrot.lane.b32.xlu1 %v1854_v13, %s2093_s8  ;;  %v102_v26 = vshrl.u32 %v88_v23, 7  ;;  %vm68_vm0 = vcmp.ge.s32.totalorder %v2210_v25, 1  ;;  %vm70_vm1 = vcmp.ge.s32.totalorder %v2215_v27, 1  ;;  %v2234_v33 = vand.u32 127, %v88_v23  ;;  %s2105_s5 = smov [#allocation7]  }
  0x2d   :  { %1845 = vrot.lane.b32.xlu0 %v1844_v14, %s2093_s8  ;;  %v160_v29 = vsel %vm68_vm0, 1, %v2097_v0  ;;  %vm99_vm2 = vmand %vm68_vm0, %vm70_vm1  ;;  %vm71_vm3 = vcmp.le.s32.totalorder %v2215_v27, 14  ;;  %v2339_v45 = vsel %vm70_vm1, 1, %v2097_v0  ;;  %s1625_s16 = sshll.u32 %s2105_s5, 4  ;;  %s1626_s16 = int_to_ptr.vmem [resolvable:$true] %s1625_s16 }
  0x2e   :  { %v2219_v28 = vsub.s32 1, %v102_v26  ;;  %v2224_v30 = vsub.s32 3, %v102_v26  ;;  %v2226_v31 = vsub.s32 0, %v102_v26  ;;  %v2228_v32 = vsub.s32 2, %v102_v26  ;;  %vm410_vm10 = vmand %vm68_vm0, %vm71_vm3  ;;  %p2068_p3 = scmp.lt.s32.totalorder %s1626_s16, %s1626_s16 }
  0x2f   :  { %v2241_v38 = vsel %vm99_vm2, 1, %v2097_v0  ;;  %vm90_vm4 = vcmp.lt.s32.totalorder %v2234_v33, 17  ;;  %vm151_vm5 = vcmp.lt.s32.totalorder %v2234_v33, 16  ;;  %v2277_v59 = vsel %vm410_vm10, 1, %v2097_v0 }
  0x30   :  { %1860 = vrot.lane.b32.xlu1 %v1859_v15, %s2093_s8  ;;  %v168_v34 = vrot.slane %v160_v29, %v2219_v28  ;;  %v176_v35 = vrot.slane %v160_v29, %v2224_v30  ;;  %v164_v36 = vrot.slane %v160_v29, %v2226_v31  ;;  %v172_v37 = vrot.slane %v160_v29, %v2228_v32 }
  0x31   :  { %1850 = vrot.lane.b32.xlu0 %v1849_v16, %s2093_s8  ;;  %v108_v41 = vrot.slane %v2241_v38, %v2219_v28  ;;  %v104_v49 = vrot.slane %v2241_v38, %v2226_v31  ;;  %v116_v50 = vrot.slane %v2241_v38, %v2224_v30  ;;  %vm201_vm0 = vcmask 130048  }
  0x32   :  { %vm2248_vm6 = vcmp.eq.s32.totalorder %v168_v34, 1  ;;  %vm2252_vm7 = vcmp.eq.s32.totalorder %v176_v35, 1  ;;  %vm2256_vm8 = vcmp.eq.s32.totalorder %v164_v36, 1  ;;  %vm2260_vm9 = vcmp.eq.s32.totalorder %v172_v37, 1 }
  0x33   :  { %vm2272_vm11 = vcmp.eq.s32.totalorder %v108_v41, 1  ;;  %vm1644_vm12 = vmpackc.low %vm2252_vm7, %vm2252_vm7  ;;  %v419_v26 = vrot.slane %v2277_v59, %v2219_v28  ;;  %vm2328_vm7 = vcmp.eq.s32.totalorder %v116_v50, 1 }
  0x34   :  { %1870 = vrot.lane.b32.xlu1 %v1849_v16, %s2098_s2  ;;  %vm1637_vm13 = vmpackc.low %vm2248_vm6, %vm2248_vm6  ;;  %vm2324_vm6 = vcmp.eq.s32.totalorder %v104_v49, 1  ;;  %v427_v49 = vrot.slane %v2277_v59, %v2224_v30 }
  0x35   :  { %1865 = vrot.lane.b32.xlu0 %v1844_v14, %s2098_s2  ;;  %vm1640_vm14 = vmpackc.low %vm2256_vm8, %vm2256_vm8  ;;  %vm2354_vm10 = vcmp.eq.s32.totalorder %v419_v26, 1  ;;  %v2007_v26 = vld [vmem:[#allocation5] sm:$0xff]  }
  0x36   :  { %vm1647_vm15 = vmpackc.low %vm2260_vm9, %vm2260_vm9 }
  0x37   :  { %vm1652_vm2 = vmpackc.low %vm2272_vm11, %vm2272_vm11 }
  0x38   :  { %1880 = vrot.lane.b32.xlu1 %v1859_v15, %s2098_s2  ;;  %vm1655_vm9 = vmpackc.low %vm2324_vm6, %vm2324_vm6 }
  0x39   :  { %1875 = vrot.lane.b32.xlu0 %v1854_v13, %s2098_s2  ;;  %vm1659_vm11 = vmpackc.low %vm2328_vm7, %vm2328_vm7 }
  0x3c   :  { %1890 = vrot.lane.b32.xlu1 %v1849_v16, %s2099_s24 }
  0x3d   :  { %1885 = vrot.lane.b32.xlu0 %v1844_v14, %s2099_s24 }
  0x40   :  { %1900 = vrot.lane.b32.xlu1 %v1859_v15, %s2099_s24 }
  0x41   :  { %1895 = vrot.lane.b32.xlu0 %v1854_v13, %s2099_s24 }
  0x44   :  { %1910 = vrot.lane.b32.xlu1 %v1849_v16, %s2100_s25 }
  0x45   :  { %1905 = vrot.lane.b32.xlu0 %v1844_v14, %s2100_s25 }
  0x48   :  { %1920 = vrot.lane.b32.xlu1 %v1859_v15, %s2100_s25 }
  0x49   :  { %1915 = vrot.lane.b32.xlu0 %v1854_v13, %s2100_s25 }
  0x4c   :  { %1930 = vrot.lane.b32.xlu1 %v1849_v16, %s2101_s26 }
  0x4d   :  { %1925 = vrot.lane.b32.xlu0 %v1844_v14, %s2101_s26 }
  0x50   :  { %1940 = vrot.lane.b32.xlu1 %v1859_v15, %s2101_s26 }
  0x51   :  { %1935 = vrot.lane.b32.xlu0 %v1854_v13, %s2101_s26 }
  0x54   :  { %1950 = vrot.lane.b32.xlu1 %v1849_v16, %s2102_s27 }
  0x55   :  { %1945 = vrot.lane.b32.xlu0 %v1844_v14, %s2102_s27 }
  0x58   :  { %1960 = vrot.lane.b32.xlu1 %v1859_v15, %s2102_s27 }
  0x59   :  { %1955 = vrot.lane.b32.xlu0 %v1854_v13, %s2102_s27 }
  0x5c   :  { %1970 = vrot.lane.b32.xlu1 %v1849_v16, %s2103_s28 }
  0x5d   :  { %1965 = vrot.lane.b32.xlu0 %v1844_v14, %s2103_s28 }
  0x60   :  { %1980 = vrot.lane.b32.xlu1 %v1859_v15, %s2103_s28 }
  0x61   :  { %1975 = vrot.lane.b32.xlu0 %v1854_v13, %s2103_s28 }
  0x64   :  { %1990 = vrot.lane.b32.xlu1 %v1849_v16, %s2104_s29 }
  0x65   :  { %1985 = vrot.lane.b32.xlu0 %v1844_v14, %s2104_s29 }
  0x68   :  { %2000 = vrot.lane.b32.xlu1 %v1859_v15, %s2104_s29 }
  0x69   :  { %1995 = vrot.lane.b32.xlu0 %v1854_v13, %s2104_s29 }
  0x6c   :  { %1500 = vperm.xlu1 %2005, %v1492_v21  }
  0x6d   :  { %1495 = vperm.xlu0 %2004, %v1491_v22   ;;  %v112_v22 = vrot.slane %v2241_v38, %v2228_v32 }
  0x6f   :  { %vm2332_vm8 = vcmp.eq.s32.totalorder %v112_v22, 1  ;;  %v590_v22 = vrot.slane %v2339_v45, %v2224_v30 }
  0x70   :  { %1527 = vperm.xlu1 %2005, %v1524_v24   ;;  %v2006_v24 = vld [vmem:[#allocation5 + $0x8] sm:$0xff]  }
  0x9e   :  { %v1856_v39 = vpop.permute.xlu1 %1855 }
  0x9f   :  { %v1846_v40 = vpop.permute.xlu0 %1845  ;;  %v1858_v46 = vunpack.i.h.bf16 %v1856_v39  ;;  %v1857_v47 = vunpack.i.l.bf16 %v1856_v39 }
  0xa0   :  { %v1848_v51 = vunpack.i.h.bf16 %v1846_v40  ;;  %v1847_v52 = vunpack.i.l.bf16 %v1846_v40 }
  0xa2   :  { %v1861_v48 = vpop.permute.xlu1 %1860 }
  0xa3   :  { %v1863_v53 = vunpack.i.h.bf16 %v1861_v48  ;;  %v1862_v54 = vunpack.i.l.bf16 %v1861_v48  ;;  %v1851_v55 = vpop.permute.xlu0 %1850 }
  0xa4   :  { %v1853_v56 = vunpack.i.h.bf16 %v1851_v55  ;;  %v1852_v57 = vunpack.i.l.bf16 %v1851_v55 }
  0xa5   :  { %v152_v60 = vsel %vm151_vm5, %v1857_v47, %v1862_v54  ;;  %v153_v61 = vsel %vm151_vm5, %v1858_v46, %v1863_v53  ;;  %v158_v62 = vsel %vm151_vm5, %v1862_v54, %v1847_v52  ;;  %v159_v63 = vsel %vm151_vm5, %v1863_v53, %v1848_v51 }
  0xa6   :  { %v1871_v4 = vpop.permute.xlu1 %1870  ;;  %v156_v5 = vsel %vm151_vm5, %v1847_v52, %v1852_v57  ;;  %v157_v7 = vsel %vm151_vm5, %v1848_v51, %v1853_v56  ;;  %v1645_v8 = vpack.c.bf16 %v153_v61, %v152_v60  ;;  %v1641_v9 = vpack.c.bf16 %v159_v63, %v158_v62 }
  0xa7   :  { %v1873_v10 = vunpack.i.h.bf16 %v1871_v4  ;;  %v1872_v11 = vunpack.i.l.bf16 %v1871_v4  ;;  %v1866_v12 = vpop.permute.xlu0 %1865  ;;  %v1638_v13 = vpack.c.bf16 %v157_v7, %v156_v5  ;;  %v154_v14 = vsel %vm151_vm5, %v1852_v57, %v1857_v47 }
  0xa8   :  { %v1868_v15 = vunpack.i.h.bf16 %v1866_v12  ;;  %v1867_v16 = vunpack.i.l.bf16 %v1866_v12  ;;  %1646 = vmatprep.subr.msk.bf16.mxu1 %vm1644_vm12, %v1645_v8  ;;  %v155_v21 = vsel %vm151_vm5, %v1853_v56, %v1858_v46  ;;  %vm401_vm5 = vcmp.lt.s32.totalorder %v2234_v33, 15  ;;  %vm1662_vm12 = vmpackc.low %vm2332_vm8, %vm2332_vm8 }
  0xa9   :  { %1639 = vmatprep.subr.msk.bf16.mxu0 %vm1637_vm13, %v1638_v13  ;;  %v1648_v23 = vpack.c.bf16 %v155_v21, %v154_v14  ;;  %v415_v4 = vrot.slane %v2277_v59, %v2226_v31  ;;  %v423_v5 = vrot.slane %v2277_v59, %v2228_v32  ;;  %v582_v7 = vrot.slane %v2339_v45, %v2219_v28 }
  0xaa   :  { %v96_v29 = vsel %vm90_vm4, %v1868_v15, %v1873_v10  ;;  %v95_v34 = vsel %vm90_vm4, %v1867_v16, %v1872_v11  ;;  %1642 = vmatpush1.bf16.msk.msra.mxu0 %vm1640_vm14, %v1641_v9  ;;  %v1881_v35 = vpop.permute.xlu1 %1880  ;;  %vm565_vm13 = vcmp.lt.s32.totalorder %v2234_v33, 1  ;;  %vm2396_vm14 = vcmp.eq.s32.totalorder %v427_v49, 1 }
  0xab   :  { %v1653_v37 = vpack.c.bf16 %v96_v29, %v95_v34  ;;  %1649 = vmatpush1.bf16.msk.msra.mxu1 %vm1647_vm15, %v1648_v23  ;;  %v1883_v38 = vunpack.i.h.bf16 %v1881_v35  ;;  %v1882_v39 = vunpack.i.l.bf16 %v1881_v35  ;;  %v1876_v40 = vpop.permute.xlu0 %1875  ;;  %vm2400_vm15 = vcmp.eq.s32.totalorder %v415_v4, 1  ;;  %vm1674_vm7 = vmpackc.low %vm2396_vm14, %vm2396_vm14 }
  0xac   :  { %v1878_v42 = vunpack.i.h.bf16 %v1876_v40  ;;  %v1877_v43 = vunpack.i.l.bf16 %v1876_v40  ;;  %vm2414_vm6 = vcmp.eq.s32.totalorder %v582_v7, 1  ;;  %vm1670_vm8 = vmpackc.low %vm2400_vm15, %vm2400_vm15 }
  0xad   :  { %v97_v46 = vsel %vm90_vm4, %v1882_v39, %v1867_v16  ;;  %v98_v47 = vsel %vm90_vm4, %v1883_v38, %v1868_v15  ;;  %1643 = vmatmul.mubr.msk.bf16.vlgmr.msra.gmra.mrb[0].mxu0 %vm201_vm0, %v2006_v24  ;;  %1654 = vmatprep.subr.msk.bf16.mxu0 %vm1652_vm2, %v1653_v37  ;;  %vm2410_vm2 = vcmp.eq.s32.totalorder %v423_v5, 1 }
  0xae   :  { %v1656_v50 = vpack.c.bf16 %v98_v47, %v97_v46  ;;  %v92_v51 = vsel %vm90_vm4, %v1878_v42, %v1883_v38  ;;  %v94_v52 = vsel %vm90_vm4, %v1873_v10, %v1878_v42  ;;  %v91_v53 = vsel %vm90_vm4, %v1877_v43, %v1882_v39  ;;  %1650 = vmatmul.mubr.msk.bf16.vlgmr.msra.gmra.mrb[0].mxu1 %vm201_vm0, %v2006_v24  ;;  %v1891_v54 = vpop.permute.xlu1 %1890 }
  0xaf   :  { %v93_v55 = vsel %vm90_vm4, %v1872_v11, %v1877_v43  ;;  %v1660_v56 = vpack.c.bf16 %v92_v51, %v91_v53  ;;  %v1893_v57 = vunpack.i.h.bf16 %v1891_v54  ;;  %v1892_v58 = vunpack.i.l.bf16 %v1891_v54  ;;  %v1886_v60 = vpop.permute.xlu0 %1885  ;;  %331 = vmatprep.mubr.bf16.mxu0 %v2097_v0  ;;  %374 = vmatprep.mubr.bf16.mxu1 %v2097_v0  ;;  %vm1667_vm4 = vmpackc.low %vm2354_vm10, %vm2354_vm10 }
  0xb0   :  { %v1663_v61 = vpack.c.bf16 %v94_v52, %v93_v55  ;;  %v1888_v62 = vunpack.i.h.bf16 %v1886_v60  ;;  %v1887_v63 = vunpack.i.l.bf16 %v1886_v60  ;;  %1657 = vmatpush1.bf16.msk.msra.mxu0 %vm1655_vm9, %v1656_v50  ;;  %vm1677_vm9 = vmpackc.low %vm2410_vm2, %vm2410_vm2  ;;  %vm2445_vm10 = vcmp.eq.s32.totalorder %v590_v22, 1 }
  0xb1   :  { %1661 = vmatprep.subr.msk.bf16.mxu1 %vm1659_vm11, %v1660_v56  ;;  %v578_v60 = vrot.slane %v2339_v45, %v2226_v31  ;;  %vm1689_vm11 = vmpackc.low %vm2445_vm10, %vm2445_vm10  ;;  %vm69_vm2 = vcmp.le.s32.totalorder %v2210_v25, 14 }
  0xb2   :  { %v407_v8 = vsel %vm401_vm5, %v1888_v62, %v1893_v57  ;;  %v406_v9 = vsel %vm401_vm5, %v1887_v63, %v1892_v58  ;;  %1664 = vmatpush1.bf16.msk.msra.mxu1 %vm1662_vm12, %v1663_v61  ;;  %v1901_v10 = vpop.permute.xlu1 %1900  ;;  %v586_v61 = vrot.slane %v2339_v45, %v2228_v32 }
  0xb3   :  { %v1668_v11 = vpack.c.bf16 %v407_v8, %v406_v9  ;;  %v1903_v12 = vunpack.i.h.bf16 %v1901_v10  ;;  %v1902_v59 = vunpack.i.l.bf16 %v1901_v10  ;;  %v1896_v13 = vpop.permute.xlu0 %1895  ;;  %vm591_vm12 = vcmp.eq.s32.totalorder %v578_v60, 1  ;;  %v2008_v10 = vld [vmem:[#allocation5 + $0x10] sm:$0xff]  }
  0xb4   :  { %v1898_v15 = vunpack.i.h.bf16 %v1896_v13  ;;  %v1897_v16 = vunpack.i.l.bf16 %v1896_v13  ;;  %vm1685_vm14 = vmpackc.low %vm591_vm12, %vm591_vm12  ;;  %v2477_v13 = vsel %vm71_vm3, 1, %v2097_v0 }
  0xb5   :  { %v408_v23 = vsel %vm401_vm5, %v1902_v59, %v1887_v63  ;;  %v409_v24 = vsel %vm401_vm5, %v1903_v12, %v1888_v62  ;;  %1669 = vmatprep.subr.msk.bf16.mxu0 %vm1667_vm4, %v1668_v11  ;;  %vm593_vm4 = vcmp.eq.s32.totalorder %v586_v61, 1  ;;  %v866_v3 = vrot.slane %v2477_v13, %v2226_v31 }
  0xb6   :  { %v1671_v35 = vpack.c.bf16 %v409_v24, %v408_v23  ;;  %v403_v36 = vsel %vm401_vm5, %v1898_v15, %v1903_v12  ;;  %v405_v37 = vsel %vm401_vm5, %v1893_v57, %v1898_v15  ;;  %v402_v38 = vsel %vm401_vm5, %v1897_v16, %v1902_v59  ;;  %v1911_v39 = vpop.permute.xlu1 %1910  ;;  %vm1692_vm15 = vmpackc.low %vm593_vm4, %vm593_vm4 }
  0xb7   :  { %v404_v40 = vsel %vm401_vm5, %v1892_v58, %v1897_v16  ;;  %v1675_v41 = vpack.c.bf16 %v403_v36, %v402_v38  ;;  %v1913_v42 = vunpack.i.h.bf16 %v1911_v39  ;;  %v1912_v43 = vunpack.i.l.bf16 %v1911_v39  ;;  %v1906_v44 = vpop.permute.xlu0 %1905  ;;  %vm1682_vm5 = vmpackc.low %vm2414_vm6, %vm2414_vm6 }
  0xb8   :  { %v1678_v46 = vpack.c.bf16 %v405_v37, %v404_v40  ;;  %v1908_v47 = vunpack.i.h.bf16 %v1906_v44  ;;  %v1907_v48 = vunpack.i.l.bf16 %v1906_v44  ;;  %v870_v16 = vrot.slane %v2477_v13, %v2219_v28  ;;  %v2009_v37 = vld [vmem:[#allocation5 + $0x18] sm:$0xff]  }
  0xb9   :  { %1658 = vmatmul.mubr.msk.bf16.vlgmr.msra.gmra.mrb[0].mxu0 %vm201_vm0, %v2007_v26  ;;  %1676 = vmatprep.subr.msk.bf16.mxu1 %vm1674_vm7, %v1675_v41  ;;  %vm1025_vm7 = vmand %vm69_vm2, %vm70_vm1  ;;  %v874_v6 = vrot.slane %v2477_v13, %v2228_v32  ;;  %vm2570_vm10 = vcmp.eq.s32.totalorder %v866_v3, 1 }
  0xba   :  { %1665 = vmatmul.mubr.msk.bf16.vlgmr.msra.gmra.mrb[0].mxu1 %vm201_vm0, %v2007_v26  ;;  %1672 = vmatpush1.bf16.msk.msra.mxu0 %vm1670_vm8, %v1671_v35  ;;  %v571_v49 = vsel %vm565_vm13, %v1908_v47, %v1913_v42  ;;  %v570_v50 = vsel %vm565_vm13, %v1907_v48, %v1912_v43  ;;  %v1921_v51 = vpop.permute.xlu1 %1920  ;;  %vm2510_vm6 = vcmp.eq.s32.totalorder %v870_v16, 1  ;;  %vm1707_vm4 = vmpackc.low %vm2570_vm10, %vm2570_vm10 }
  0xbb   :  { %v1683_v52 = vpack.c.bf16 %v571_v49, %v570_v50  ;;  %1679 = vmatpush1.bf16.msk.msra.mxu1 %vm1677_vm9, %v1678_v46  ;;  %v1923_v53 = vunpack.i.h.bf16 %v1921_v51  ;;  %v1922_v54 = vunpack.i.l.bf16 %v1921_v51  ;;  %v1916_v55 = vpop.permute.xlu0 %1915  ;;  %487 = vmatprep.mubr.bf16.mxu0 %v2097_v0  ;;  %vm1704_vm9 = vmpackc.low %vm2510_vm6, %vm2510_vm6 }
  0xbc   :  { %v1918_v57 = vunpack.i.h.bf16 %v1916_v55  ;;  %v1917_v58 = vunpack.i.l.bf16 %v1916_v55  ;;  %530 = vmatprep.mubr.bf16.mxu1 %v2097_v0 }
  0xbd   :  { %1684 = vmatprep.subr.msk.bf16.mxu0 %vm1682_vm5, %v1683_v52  ;;  %v572_v4 = vsel %vm565_vm13, %v1922_v54, %v1907_v48  ;;  %v573_v5 = vsel %vm565_vm13, %v1923_v53, %v1908_v47  ;;  %v2527_v47 = vsel %vm1025_vm7, 1, %v2097_v0  ;;  %vm1016_vm5 = vcmp.lt.s32.totalorder %v2234_v33, 113 }
  0xbe   :  { %v567_v62 = vsel %vm565_vm13, %v1918_v57, %v1923_v53  ;;  %v566_v63 = vsel %vm565_vm13, %v1917_v58, %v1922_v54  ;;  %v569_v45 = vsel %vm565_vm13, %v1913_v42, %v1918_v57  ;;  %v568_v8 = vsel %vm565_vm13, %v1912_v43, %v1917_v58  ;;  %v2471_v11 = vpop.permute.xlu1 %1930 }
  0xbf   :  { %v1690_v7 = vpack.c.bf16 %v567_v62, %v566_v63  ;;  %v2469_v9 = vpop.permute.xlu0 %1925  ;;  %v1686_v12 = vpack.c.bf16 %v573_v5, %v572_v4  ;;  %v1693_v59 = vpack.c.bf16 %v569_v45, %v568_v8  ;;  %vm853_vm13 = vcmp.lt.s32.totalorder %v2234_v33, 127  ;;  %v2014_v63 = vld [vmem:[#allocation5 + $0x20] sm:$0xff]  }
  0xc0   :  { %v1933_v21 = vunpack.i.h.bf16 %v2471_v11  ;;  %v1932_v22 = vunpack.i.l.bf16 %v2471_v11  ;;  %v1928_v26 = vunpack.i.h.bf16 %v2469_v9  ;;  %v1927_v29 = vunpack.i.l.bf16 %v2469_v9  ;;  %v2016_v11 = vld [vmem:[#allocation5 + $0x30] sm:$0xff]  }
  0xc1   :  { %1691 = vmatprep.subr.msk.bf16.mxu1 %vm1689_vm11, %v1690_v7  ;;  %v1042_v57 = vrot.slane %v2527_v47, %v2224_v30  ;;  %vm2576_vm11 = vcmp.eq.s32.totalorder %v874_v6, 1  ;;  %vm1180_vm7 = vcmp.lt.s32.totalorder %v2234_v33, 112 }
  0xc2   :  { %v1941_v15 = vpop.permute.xlu1 %1940  ;;  %v858_v55 = vsel %vm853_vm13, %v1927_v29, %v1932_v22  ;;  %v859_v56 = vsel %vm853_vm13, %v1928_v26, %v1933_v21 }
  0xc3   :  { %v1936_v14 = vpop.permute.xlu0 %1935  ;;  %v1943_v34 = vunpack.i.h.bf16 %v1941_v15  ;;  %v1942_v35 = vunpack.i.l.bf16 %v1941_v15  ;;  %v1708_v8 = vpack.c.bf16 %v859_v56, %v858_v55  ;;  %v2611_v15 = vsel %vm69_vm2, 1, %v2097_v0 }
  0xc4   :  { %v1938_v23 = vunpack.i.h.bf16 %v1936_v14  ;;  %v1937_v24 = vunpack.i.l.bf16 %v1936_v14  ;;  %v1201_v55 = vrot.slane %v2611_v15, %v2228_v32 }
  0xc5   :  { %1673 = vmatmul.mubr.msk.bf16.vlgmr.msra.gmra.mrb[0].mxu0 %vm201_vm0, %v2008_v10  ;;  %v860_v40 = vsel %vm853_vm13, %v1942_v35, %v1927_v29  ;;  %v861_v41 = vsel %vm853_vm13, %v1943_v34, %v1928_v26 }
  0xc6   :  { %1680 = vmatmul.mubr.msk.bf16.vlgmr.msra.gmra.mrb[0].mxu1 %vm201_vm0, %v2008_v10  ;;  %1687 = vmatpush1.bf16.msk.msra.mxu0 %vm1685_vm14, %v1686_v12  ;;  %v857_v38 = vsel %vm853_vm13, %v1933_v21, %v1938_v23  ;;  %v2504_v39 = vpop.permute.xlu1 %1950  ;;  %v1712_v46 = vpack.c.bf16 %v861_v41, %v860_v40  ;;  %v854_v58 = vsel %vm853_vm13, %v1937_v24, %v1942_v35  ;;  %vm2597_vm14 = vcmp.eq.s32.totalorder %v1042_v57, 1 }
  0xc7   :  { %1694 = vmatpush1.bf16.msk.msra.mxu1 %vm1692_vm15, %v1693_v59  ;;  %650 = vmatprep.mubr.bf16.mxu0 %v2097_v0  ;;  %v2498_v36 = vpop.permute.xlu0 %1945  ;;  %v1953_v1 = vunpack.i.h.bf16 %v2504_v39  ;;  %v1952_v2 = vunpack.i.l.bf16 %v2504_v39  ;;  %v855_v60 = vsel %vm853_vm13, %v1938_v23, %v1943_v34  ;;  %vm1714_vm15 = vmpackc.low %vm2576_vm11, %vm2576_vm11  ;;  %v1038_v23 = vrot.slane %v2527_v47, %v2228_v32 }
  0xc8   :  { %693 = vmatprep.mubr.bf16.mxu1 %v2097_v0  ;;  %743 = vmatprep.subr.bf16.mxu0 %v1698_v17  ;;  %v878_v17 = vrot.slane %v2477_v13, %v2224_v30  ;;  %v1948_v51 = vunpack.i.h.bf16 %v2498_v36  ;;  %v1947_v52 = vunpack.i.l.bf16 %v2498_v36  ;;  %v1715_v12 = vpack.c.bf16 %v855_v60, %v854_v58  ;;  %vm1726_vm6 = vmpackc.low %vm2597_vm14, %vm2597_vm14 }
  0xc9   :  { %786 = vmatprep.subr.bf16.mxu1 %v1700_v18  ;;  %v856_v18 = vsel %vm853_vm13, %v1932_v22, %v1937_v24  ;;  %v1030_v22 = vrot.slane %v2527_v47, %v2226_v31  ;;  %v1197_v24 = vrot.slane %v2611_v15, %v2219_v28  ;;  %v1205_v40 = vrot.slane %v2611_v15, %v2224_v30 }
  0xca   :  { %vm2518_vm8 = vcmp.eq.s32.totalorder %v878_v17, 1  ;;  %v1705_v44 = vpack.c.bf16 %v857_v38, %v856_v18  ;;  %v2542_v49 = vpop.permute.xlu1 %1960  ;;  %v1021_v18 = vsel %vm1016_vm5, %v1947_v52, %v1952_v2  ;;  %v1022_v39 = vsel %vm1016_vm5, %v1948_v51, %v1953_v1 }
  0xcb   :  { %vm1711_vm1 = vmpackc.low %vm2518_vm8, %vm2518_vm8  ;;  %v2536_v48 = vpop.permute.xlu0 %1955  ;;  %v1963_v53 = vunpack.i.h.bf16 %v2542_v49  ;;  %v1962_v54 = vunpack.i.l.bf16 %v2542_v49  ;;  %vm2648_vm8 = vcmp.eq.s32.totalorder %v1030_v22, 1  ;;  %v1723_v6 = vpack.c.bf16 %v1022_v39, %v1021_v18 }
  0xcc   :  { %v1957_v50 = vunpack.i.l.bf16 %v2536_v48  ;;  %vm1722_vm10 = vmpackc.low %vm2648_vm8, %vm2648_vm8  ;;  %vm2679_vm11 = vcmp.eq.s32.totalorder %v1205_v40, 1 }
  0xcd   :  { %v1023_v9 = vsel %vm1016_vm5, %v1962_v54, %v1947_v52  ;;  %v1024_v10 = vsel %vm1016_vm5, %v1963_v53, %v1948_v51 }
  0xce   :  { %v1019_v7 = vsel %vm1016_vm5, %v1952_v2, %v1957_v50  ;;  %v2584_v45 = vpop.permute.xlu1 %1970  ;;  %v1727_v14 = vpack.c.bf16 %v1024_v10, %v1023_v9  ;;  %v1017_v41 = vsel %vm1016_vm5, %v1957_v50, %v1962_v54  ;;  %v1193_v54 = vrot.slane %v2611_v15, %v2226_v31 }
  0xcf   :  { %v2574_v62 = vpop.permute.xlu0 %1965  ;;  %v1973_v26 = vunpack.i.h.bf16 %v2584_v45  ;;  %v1972_v29 = vunpack.i.l.bf16 %v2584_v45 }
  0xd0   :  { %v1968_v17 = vunpack.i.h.bf16 %v2574_v62  ;;  %v1967_v36 = vunpack.i.l.bf16 %v2574_v62  ;;  %vm2716_vm14 = vcmp.eq.s32.totalorder %v1193_v54, 1 }
  0xd1   :  { %1688 = vmatmul.mubr.msk.bf16.vlgmr.msra.gmra.mrb[0].mxu0 %vm201_vm0, %v2009_v37 }
  0xd2   :  { %1695 = vmatmul.mubr.msk.bf16.vlgmr.msra.gmra.mrb[0].mxu1 %vm201_vm0, %v2009_v37  ;;  %744 = vmatpush1.bf16.msra.mxu0 %v1697_v19  ;;  %v1034_v19 = vrot.slane %v2527_v47, %v2219_v28  ;;  %v2620_v21 = vpop.permute.xlu1 %1980  ;;  %v1186_v45 = vsel %vm1180_vm7, %v1968_v17, %v1973_v26 }
  0xd3   :  { %787 = vmatpush1.bf16.msra.mxu1 %v1699_v20  ;;  %775 = vmatprep.mubr.bf16.mxu0 %v2097_v0  ;;  %v1958_v20 = vunpack.i.h.bf16 %v2536_v48  ;;  %v2617_v16 = vpop.permute.xlu0 %1975  ;;  %v1983_v37 = vunpack.i.h.bf16 %v2620_v21  ;;  %v1982_v38 = vunpack.i.l.bf16 %v2620_v21 }
  0xd4   :  { %818 = vmatprep.mubr.bf16.mxu1 %v2097_v0  ;;  %1706 = vmatprep.subr.msk.bf16.mxu0 %vm1704_vm9, %v1705_v44  ;;  %vm2590_vm12 = vcmp.eq.s32.totalorder %v1034_v19, 1  ;;  %v1978_v34 = vunpack.i.h.bf16 %v2617_v16  ;;  %v1977_v35 = vunpack.i.l.bf16 %v2617_v16  ;;  %vm2654_vm9 = vcmp.eq.s32.totalorder %v1038_v23, 1 }
  0xd5   :  { %1713 = vmatprep.subr.msk.bf16.mxu1 %vm1711_vm1, %v1712_v46  ;;  %v1020_v5 = vsel %vm1016_vm5, %v1953_v1, %v1958_v20  ;;  %vm1719_vm13 = vmpackc.low %vm2590_vm12, %vm2590_vm12  ;;  %v1018_v42 = vsel %vm1016_vm5, %v1958_v20, %v1963_v53  ;;  %v2015_v46 = vld [vmem:[#allocation5 + $0x28] sm:$0xff]   ;;  %v1187_v19 = vsel %vm1180_vm7, %v1982_v38, %v1967_v36  ;;  %v1188_v1 = vsel %vm1180_vm7, %v1983_v37, %v1968_v17 }
  0xd6   :  { %v1720_v13 = vpack.c.bf16 %v1020_v5, %v1019_v7  ;;  %v1184_v48 = vsel %vm1180_vm7, %v1973_v26, %v1978_v34  ;;  %v1183_v49 = vsel %vm1180_vm7, %v1972_v29, %v1977_v35  ;;  %v2662_v3 = vpop.permute.xlu1 %1990  ;;  %vm2668_vm1 = vcmp.eq.s32.totalorder %v1197_v24, 1  ;;  %vm1352_vm5 = vmand %vm69_vm2, %vm71_vm3 }
  0xd7   :  { %v2652_v44 = vpop.permute.xlu0 %1985  ;;  %v1730_v20 = vpack.c.bf16 %v1018_v42, %v1017_v41  ;;  %vm1729_vm12 = vmpackc.low %vm2654_vm9, %vm2654_vm9  ;;  %v1735_v51 = vpack.c.bf16 %v1184_v48, %v1183_v49  ;;  %v1742_v27 = vpack.c.bf16 %v1188_v1, %v1187_v19  ;;  %v1353_v25 = vsel %vm1352_vm5, 1, %v2097_v0 }
  0xd8   :  { %vm1734_vm3 = vmpackc.low %vm2668_vm1, %vm2668_vm1  ;;  %v1361_v56 = vrot.slane %v1353_v25, %v2219_v28  ;;  %v1993_v57 = vunpack.i.h.bf16 %v2662_v3  ;;  %v1992_v58 = vunpack.i.l.bf16 %v2662_v3  ;;  %v1988_v62 = vunpack.i.h.bf16 %v2652_v44 }
  0xd9   :  { %vm1741_vm2 = vmpackc.low %vm2679_vm11, %vm2679_vm11  ;;  %v1185_v7 = vsel %vm1180_vm7, %v1967_v36, %v1972_v29  ;;  %v1369_v28 = vrot.slane %v1353_v25, %v2224_v30  ;;  %v1182_v9 = vsel %vm1180_vm7, %v1978_v34, %v1983_v37  ;;  %v1357_v24 = vrot.slane %v1353_v25, %v2226_v31  ;;  %v2017_v36 = vld [vmem:[#allocation5 + $0x38] sm:$0xff]  }
  0xda   :  { %v2001_v53 = vpop.permute.xlu1 %2000  ;;  %v1365_v26 = vrot.slane %v1353_v25, %v2228_v32  ;;  %v2018_v32 = vld [vmem:[#allocation5 + $0x40] sm:$0xff]  }
  0xdb   :  { %v1996_v52 = vpop.permute.xlu0 %1995  ;;  %v2003_v4 = vunpack.i.h.bf16 %v2001_v53  ;;  %v2002_v5 = vunpack.i.l.bf16 %v2001_v53  ;;  %vm1370_vm5 = vcmp.eq.s32.totalorder %v1357_v24, 1 }
  0xdc   :  { %v1998_v60 = vunpack.i.h.bf16 %v1996_v52  ;;  %v1997_v61 = vunpack.i.l.bf16 %v1996_v52  ;;  %vm1752_vm11 = vmpackc.low %vm1370_vm5, %vm1370_vm5 }
  0xdd   :  { %1701 = vmatmul.mubr.msk.bf16.vlgmr.msra.gmra.mrb[0].mxu0 %vm201_vm0, %v2014_v63 }
  0xde   :  { %1702 = vmatmul.mubr.msk.bf16.vlgmr.msra.gmra.mrb[0].mxu1 %vm201_vm0, %v2014_v63  ;;  %1709 = vmatpush1.bf16.msk.msra.mxu0 %vm1707_vm4, %v1708_v8  ;;  %vm1343_vm4 = vcmp.lt.s32.totalorder %v2234_v33, 111  ;;  %v1987_v63 = vunpack.i.l.bf16 %v2652_v44  ;;  %v1181_v8 = vsel %vm1180_vm7, %v1977_v35, %v1982_v38  ;;  %vm1373_vm7 = vcmp.eq.s32.totalorder %v1369_v28, 1 }
  0xdf   :  { %1716 = vmatpush1.bf16.msk.msra.mxu1 %vm1714_vm15, %v1715_v12  ;;  %938 = vmatprep.mubr.bf16.mxu0 %v2097_v0  ;;  %vm2720_vm15 = vcmp.eq.s32.totalorder %v1201_v55, 1  ;;  %v1347_v59 = vsel %vm1343_vm4, %v1993_v57, %v1998_v60  ;;  %v1346_v30 = vsel %vm1343_vm4, %v1992_v58, %v1997_v61  ;;  %v1351_v15 = vsel %vm1343_vm4, %v2003_v4, %v1988_v62  ;;  %vm1756_vm1 = vmpackc.low %vm1373_vm7, %vm1373_vm7 }
  0xe0   :  { %981 = vmatprep.mubr.bf16.mxu1 %v2097_v0  ;;  %1721 = vmatprep.subr.msk.bf16.mxu0 %vm1719_vm13, %v1720_v13  ;;  %v1738_v13 = vpack.c.bf16 %v1186_v45, %v1185_v7  ;;  %vm2732_vm13 = vcmp.eq.s32.totalorder %v1361_v56, 1  ;;  %v1745_v21 = vpack.c.bf16 %v1182_v9, %v1181_v8  ;;  %vm1744_vm8 = vmpackc.low %vm2720_vm15, %vm2720_vm15  ;;  %v1750_v22 = vpack.c.bf16 %v1347_v59, %v1346_v30 }
  0xe1   :  { %1728 = vmatprep.subr.msk.bf16.mxu1 %vm1726_vm6, %v1727_v14  ;;  %v1350_v14 = vsel %vm1343_vm4, %v2002_v5, %v1987_v63  ;;  %vm1737_vm6 = vmpackc.low %vm2716_vm14, %vm2716_vm14  ;;  %v1348_v29 = vsel %vm1343_vm4, %v1987_v63, %v1992_v58  ;;  %v1349_v34 = vsel %vm1343_vm4, %v1988_v62, %v1993_v57  ;;  %v1344_v35 = vsel %vm1343_vm4, %v1997_v61, %v2002_v5  ;;  %v1519_v58 = vld [vmem:[%s2788_s4] sm:$0x7]  ;;  %s2063_s4 = scalar_lea.vmem %s1626_s16, 512 }
  0xe2   :  { %v1757_v23 = vpack.c.bf16 %v1351_v15, %v1350_v14  ;;  %vm1749_vm9 = vmpackc.low %vm2732_vm13, %vm2732_vm13  ;;  %v1345_v17 = vsel %vm1343_vm4, %v1998_v60, %v2003_v4  ;;  %v1753_v37 = vpack.c.bf16 %v1349_v34, %v1348_v29  ;;  %p2064_p2 = scmp.ne.s32.totalorder %s1626_s16, %s2063_s4  ;;  %p2069_p4 = scmp.lt.s32.totalorder %s2063_s4, %s2063_s4 }
  0xe3   :  { %v1760_v31 = vpack.c.bf16 %v1345_v17, %v1344_v35 }
  0xe4   :  { %p2070_p5 = por %p2069_p4, %p2068_p3 }
  0xe6   :  { %p2071_p6 = pnand %p2070_p5, %p2064_p2 }
  0xe9   :  { %1710 = vmatmul.mubr.msk.bf16.vlgmr.msra.gmra.mrb[0].mxu0 %vm201_vm0, %v2015_v46 }
  0xea   :  { %1717 = vmatmul.mubr.msk.bf16.vlgmr.msra.gmra.mrb[0].mxu1 %vm201_vm0, %v2015_v46  ;;  %1724 = vmatpush1.bf16.msk.msra.mxu0 %vm1722_vm10, %v1723_v6  ;;  %vm1372_vm10 = vcmp.eq.s32.totalorder %v1365_v26, 1 }
  0xeb   :  { %1731 = vmatpush1.bf16.msk.msra.mxu1 %vm1729_vm12, %v1730_v20  ;;  %1102 = vmatprep.mubr.bf16.mxu0 %v2097_v0  ;;  %vm1759_vm12 = vmpackc.low %vm1372_vm10, %vm1372_vm10  ;;  %v1501_v38 = vpop.permute.xlu1 %1500 }
  0xec   :  { %1145 = vmatprep.mubr.bf16.mxu1 %v2097_v0  ;;  %1736 = vmatprep.subr.msk.bf16.mxu0 %vm1734_vm3, %v1735_v51  ;;  %v1496_v33 = vpop.permute.xlu0 %1495 }
  0xed   :  { %1743 = vmatprep.subr.msk.bf16.mxu1 %vm1741_vm2, %v1742_v27 }
  0xef   :  { %v1528_v60 = vpop.permute.xlu1 %1527 }
  0xf5   :  { %1725 = vmatmul.mubr.msk.bf16.vlgmr.msra.gmra.mrb[0].mxu0 %vm201_vm0, %v2016_v11 }
  0xf6   :  { %1732 = vmatmul.mubr.msk.bf16.vlgmr.msra.gmra.mrb[0].mxu1 %vm201_vm0, %v2016_v11  ;;  %1739 = vmatpush1.bf16.msk.msra.mxu0 %vm1737_vm6, %v1738_v13 }
  0xf7   :  { %1746 = vmatpush1.bf16.msk.msra.mxu1 %vm1744_vm8, %v1745_v21  ;;  %1265 = vmatprep.mubr.bf16.mxu0 %v2097_v0 }
  0xf8   :  { %1308 = vmatprep.mubr.bf16.mxu1 %v2097_v0  ;;  %1751 = vmatprep.subr.msk.bf16.mxu0 %vm1749_vm9, %v1750_v22 }
  0xf9   :  { %1758 = vmatprep.subr.msk.bf16.mxu1 %vm1756_vm1, %v1757_v23 }
 0x101   :  { %1740 = vmatmul.mubr.msk.bf16.vlgmr.msra.gmra.mrb[0].mxu0 %vm201_vm0, %v2017_v36 }
 0x102   :  { %1747 = vmatmul.mubr.msk.bf16.vlgmr.msra.gmra.mrb[0].mxu1 %vm201_vm0, %v2017_v36  ;;  %1754 = vmatpush1.bf16.msk.msra.mxu0 %vm1752_vm11, %v1753_v37 }
 0x103   :  { %1761 = vmatpush1.bf16.msk.msra.mxu1 %vm1759_vm12, %v1760_v31  ;;  %1429 = vmatprep.mubr.bf16.mxu0 %v2097_v0 }
 0x104   :  { %1472 = vmatprep.mubr.bf16.mxu1 %v2097_v0 }
 0x10d   :  { %1755 = vmatmul.mubr.msk.bf16.vlgmr.msra.gmra.mrb[0].mxu0 %vm201_vm0, %v2018_v32 }
 0x10e   :  { %1762 = vmatmul.mubr.msk.bf16.vlgmr.msra.gmra.mrb[0].mxu1 %vm201_vm0, %v2018_v32  ;;  %1565 = vmatprep.mubr.bf16.mxu0 %v2097_v0 }
 0x10f   :  { %1606 = vmatprep.mubr.bf16.mxu1 %v2097_v0 }
 0x1e0   :  { %v1431_v18 = vpop.f32.mrb[0].mxu0 }
 0x1e1   :  { %v1503_v39 = vadd.f32 %v1496_v33, %v1431_v18  ;;  %v1474_v40 = vpop.f32.mrb[0].mxu1  ;;  %v1433_v41 = vpop.f32.mrb[1].mxu0 }
 0x1e2   :  { %v1505_v42 = vadd.f32 %v1496_v33, %v1474_v40  ;;  %v1504_v43 = vadd.f32 %v1496_v33, %v1433_v41  ;;  %v1476_v44 = vpop.f32.mrb[1].mxu1  ;;  %v1435_v46 = vpop.f32.mrb[2].mxu0 }
 0x1e3   :  { %v1506_v47 = vadd.f32 %v1496_v33, %v1476_v44  ;;  %v1507_v48 = vadd.f32 %v1501_v38, %v1435_v46  ;;  %v1478_v49 = vpop.f32.mrb[2].mxu1  ;;  %v1437_v3 = vpop.f32.mrb[3].mxu0  ;;  %v1511_v2 = vmax.f32 %v1503_v39, 0.0 }
 0x1e4   :  { %v1509_v6 = vadd.f32 %v1501_v38, %v1478_v49  ;;  %v1508_v19 = vadd.f32 %v1501_v38, %v1437_v3  ;;  %v1480_v1 = vpop.f32.mrb[3].mxu1  ;;  %v1513_v50 = vmax.f32 %v1505_v42, 0.0  ;;  %v1512_v51 = vmax.f32 %v1504_v43, 0.0 }
 0x1e5   :  { %v1515_v20 = vmax.f32 %v1507_v48, 0.0  ;;  %v1510_v0 = vadd.f32 %v1501_v38, %v1480_v1  ;;  %v1514_v52 = vmax.f32 %v1506_v47, 0.0 }
 0x1e6   :  { %v1517_v27 = vmax.f32 %v1509_v6, 0.0  ;;  %v1516_v25 = vmax.f32 %v1508_v19, 0.0 }
 0x1e7   :  { %v1520_v53 = vpack.c.bf16 %v1515_v20, %v1511_v2  ;;  %v1518_v54 = vmax.f32 %v1510_v0, 0.0 }
 0x1e8   :  { %v1522_v55 = vpack.c.bf16 %v1517_v27, %v1513_v50  ;;  %v1521_v56 = vpack.c.bf16 %v1516_v25, %v1512_v51 }
 0x1e9   :  { %v1523_v57 = vpack.c.bf16 %v1518_v54, %v1514_v52 }
 0x1ea   :  { %1533 = vmatprep.subr.bf16.mxu0 %v1521_v56 }
 0x1eb   :  { %1574 = vmatprep.subr.bf16.mxu1 %v1523_v57  ;;  %1534 = vmatpush1.bf16.msra.mxu0 %v1520_v53 }
 0x1ec   :  { %1575 = vmatpush1.bf16.msra.mxu1 %v1522_v55 }
 0x1ee   :  { %1763 = vmatmul.mubr.msk.bf16.vlgmr.msra.gmra.mrb[4].mxu0 %vm201_vm0, %v1519_v58 }
 0x1ef   :  { %1764 = vmatmul.mubr.msk.bf16.vlgmr.msra.gmra.mrb[4].mxu1 %vm201_vm0, %v1519_v58 }
 0x2c1   :  { %v1567_v61 = vpop.f32.mrb[4].mxu0 }
 0x2c2   :  { %v1568_v62 = vadd.f32 %v1567_v61, %v1528_v60  ;;  %v1608_v63 = vpop.f32.mrb[4].mxu1  ;;  %v1569_v4 = vpop.f32.mrb[5].mxu0 }
 0x2c3   :  { %v1609_v5 = vadd.f32 %v1608_v63, %v1528_v60  ;;  %v1570_v7 = vadd.f32 %v1569_v4, %v1528_v60  ;;  %v1610_v45 = vpop.f32.mrb[5].mxu1  ;;  %v1571_v28 = vpop.f32.mrb[6].mxu0 }
 0x2c4   :  { %1615 = vst [vmem:[#allocation7] sm:$0x1f] %v1568_v62  ;;  %v1611_v8 = vadd.f32 %v1610_v45, %v1528_v60  ;;  %v1612_v9 = vpop.f32.mrb[6].mxu1  ;;  %v1572_v10 = vpop.f32.mrb[7].mxu0 }
 0x2c5   :  { %1617 = vst [vmem:[#allocation7 + $0x10] sm:$0x1f] %v1609_v5  ;;  %1616 = vst [vmem:[#allocation7 + $0x8] sm:$0x1f] %v1570_v7  ;;  %v1613_v11 = vpop.f32.mrb[7].mxu1 }
 0x2c6   :  { %1618 = vst [vmem:[#allocation7 + $0x18] sm:$0x1f] %v1611_v8 }
 0x2c7   :  { %2074 = shalt.err (!%p2071_p6)
}
 0x2c8   :  { %s2075_s19 = scalar_lea.hbm %s2790_s6, 512 }
 0x2c9   :  { %p2076_p7 = scmp.ne.s32.totalorder %s2790_s6, %s2075_s19  ;;  %p2079_p8 = scmp.lt.u32.totalorder %s2075_s19, %s2790_s6 }
 0x2cb   :  { %p2081_p9 = pnand %p2079_p8, %p2076_p7 }
 0x2cd   :  { %2084 = shalt.err (!%p2081_p9)
}
 0x2ce   :  { %1628 = dma.vmem_to_hbm [thread:$0]  %s1626_s16, 512, %s2790_s6, [#allocation4]  }
 0x2cf   :  { %2089 = dma.done.wait [#allocation4], 512  }
 0x2d0   :  { %2090 = vsyncadd [#allocation4], 4294966784 }
 0x2d1   :  { %1632 = vsyncpa [#allocation3], 1 }
 0x2d2   :  { %1633 = vsyncpa [#allocation6], 1 }
 0x2d3   :  { %1634 = vsyncpa [#allocation4], 1 }

</bundles_post_ra>
